<compile_context>
chip_gen: v6e
topology: v6e:2x2x1
jax: 0.10.0
libtpu: 0.0.40
codegen_flags: <defaults>
</compile_context>

<pallas_src>
import jax
import jax.numpy as jnp
from jax.experimental import pallas as pl
from jax.experimental.pallas import tpu as pltpu


def _round_up(x, m):
    return ((x + m - 1) // m) * m


def nn_forward_kernel(x_ref, w1_ref, b1_ref, w2_ref, b2_ref, w3_ref, b3_ref, o_ref):
    # fc1: bf16 MXU operands, f32 accumulate; bias-add + tanh in f32.
    h1 = jnp.tanh(
        jnp.dot(x_ref[...], w1_ref[...], preferred_element_type=jnp.float32)
        + b1_ref[...]
    )
    # TODO(synk): dropout omitted (eval-mode identity); `random` arg unused by the math.
    # fc2
    h2 = jnp.tanh(
        jnp.dot(h1.astype(jnp.bfloat16), w2_ref[...], preferred_element_type=jnp.float32)
        + b2_ref[...]
    )
    # fc3: single real output column -> VPU broadcast-multiply + XLU lane
    # reduction (both units idle relative to the MXU here), no padded matmul.
    o_ref[...] = (
        jnp.sum(h2 * w3_ref[...], axis=-1, keepdims=True) + b3_ref[...]
    )


def prepare_params(params):
    """One-time layout prep (bf16 MXU operand casts, bias/row reshapes).

    params: (w1 [K,H1], b1 [1,H1], w2 [H1,H2], b2 [1,H2], w3 [H2,1], b3 [1,1])
    """
    w1, b1, w2, b2, w3, b3 = params
    return (
        w1.astype(jnp.bfloat16),
        b1.reshape(1, -1).astype(jnp.float32),
        w2.astype(jnp.bfloat16),
        b2.reshape(1, -1).astype(jnp.float32),
        w3.reshape(1, -1).astype(jnp.float32),   # (1, H2) row for broadcast-mul
        b3.reshape(1, 1).astype(jnp.float32),
    )


def _choose_tb(B):
    """Batch tile: mult. of 16 for small B; mult. of 256 capped at 1024 for
    large B, while keeping >= 2 grid steps when B > 256 (v7x dual-TC)."""
    TB_MAX = 1024
    if B <= 256:
        return _round_up(B, 16)
    return min(TB_MAX, _round_up((B + 1) // 2, 256))


def nn_forward(x, prepared_params):
    """x: [B, input_size] float32.  prepared_params from prepare_params().
    Returns [B, 1] float32."""
    w1, b1, w2, b2, w3, b3 = prepared_params
    B, K = x.shape

    TB = _choose_tb(B)
    B_pad = _round_up(B, TB)

    # Batch padding only (no lane/contraction padding); bf16 MXU operand cast.
    if B_pad != B:
        x_in = jnp.zeros((B_pad, K), x.dtype).at[:B].set(x)
    else:
        x_in = x
    x_in = x_in.astype(jnp.bfloat16)

    # Weights / biases: whole array resident in VMEM across grid steps,
    # no double-buffering (their block index never changes).
    resident = pl.BlockSpec(memory_space=pltpu.MemorySpace.VMEM)

    out = pl.pallas_call(
        nn_forward_kernel,
        out_shape=jax.ShapeDtypeStruct((B_pad, 1), jnp.float32),
        grid=(B_pad // TB,),
        in_specs=[
            pl.BlockSpec((TB, K), lambda i: (i, 0)),   # x: batch-tiled, full K
            resident,  # w1 (bf16)
            resident,  # b1 (f32)
            resident,  # w2 (bf16)
            resident,  # b2 (f32)
            resident,  # w3 row (f32, (1, H2))
            resident,  # b3 (f32, (1, 1))
        ],
        out_specs=pl.BlockSpec((TB, 1), lambda i: (i, 0)),
        compiler_params=pltpu.CompilerParams(
            dimension_semantics=("parallel",)),
    )(x_in, w1, b1, w2, b2, w3, b3)

    return out[:B]


def init_linear(key, fan_in, fan_out):
    """PyTorch nn.Linear default init: U(-1/sqrt(fan_in), 1/sqrt(fan_in)).
    Weight returned as [fan_in, fan_out] (transposed vs. PyTorch)."""
    kw, kb = jax.random.split(key)
    bound = 1.0 / jnp.sqrt(jnp.float32(fan_in))
    w = jax.random.uniform(kw, (fan_in, fan_out), jnp.float32, -bound, bound)
    b = jax.random.uniform(kb, (1, fan_out), jnp.float32, -bound, bound)
    return w, b


def _ref_forward(x, params):
    w1, b1, w2, b2, w3, b3 = params
    h = jnp.tanh(x @ w1 + b1)
    h = jnp.tanh(h @ w2 + b2)
    return h @ w3 + b3


if __name__ == "__main__":
    # Small deterministic example consistent with NN(input_size=32, hidden_size=512)
    input_size = 32
    hidden_size = 512

    key = jax.random.PRNGKey(0)
    k_x, k_x2, k1, k2, k3 = jax.random.split(key, 5)

    w1, b1 = init_linear(k1, input_size, hidden_size // 2)   # fc1: 32 -> 256
    w2, b2 = init_linear(k2, hidden_size // 2, hidden_size)  # fc2: 256 -> 512
    w3, b3 = init_linear(k3, hidden_size, 1)                 # fc3: 512 -> 1

    params = (w1, b1, w2, b2, w3, b3)
    prepared = prepare_params(params)   # one-time layout prep, reused per call

    # Small-batch path (single grid step)
    batch = 8
    x = jax.random.normal(k_x, (batch, input_size), jnp.float32)
    out = jax.block_until_ready(nn_forward(x, prepared))
    ref = _ref_forward(x, params)
    assert out.shape == (batch, 1)
    assert jnp.allclose(out, ref, atol=3e-2, rtol=3e-2), (
        f"max abs err {jnp.max(jnp.abs(out - ref))}")

    # Multi-tile path (grid > 1, batch padding exercised)
    batch2 = 640
    x2 = jax.random.normal(k_x2, (batch2, input_size), jnp.float32)
    out2 = jax.block_until_ready(nn_forward(x2, prepared))
    ref2 = _ref_forward(x2, params)
    assert out2.shape == (batch2, 1)
    assert jnp.allclose(out2, ref2, atol=3e-2, rtol=3e-2), (
        f"max abs err {jnp.max(jnp.abs(out2 - ref2))}")

    print("KERNEL_OK")
</pallas_src>

<mosaic_0001>
module attributes {stable_mosaic.version = 11 : i64} {
  func.func @nn_forward_kernel(%arg0: i32, %arg1: memref<16x32xbf16, #tpu.memory_space<vmem>>, %arg2: memref<32x256xbf16, #tpu.memory_space<vmem>>, %arg3: memref<1x256xf32, #tpu.memory_space<vmem>>, %arg4: memref<256x512xbf16, #tpu.memory_space<vmem>>, %arg5: memref<1x512xf32, #tpu.memory_space<vmem>>, %arg6: memref<1x512xf32, #tpu.memory_space<vmem>>, %arg7: memref<1x1xf32, #tpu.memory_space<vmem>>, %arg8: memref<16x1xf32, #tpu.memory_space<vmem>>) attributes {dimension_semantics = [#tpu.dimension_semantics<parallel>], iteration_bounds = array<i64: 1>, scalar_prefetch = 0 : i64, scratch_operands = 0 : i64, tpu.core_type = #tpu.core_type<tc>, window_params = [{transform_indices = @transform_0, window_bounds = array<i64: 16, 32>}, {pipeline_mode = #tpu.pipeline_mode<synchronous>, transform_indices = @transform_1, window_bounds = array<i64: 32, 256>}, {pipeline_mode = #tpu.pipeline_mode<synchronous>, transform_indices = @transform_2, window_bounds = array<i64: 1, 256>}, {pipeline_mode = #tpu.pipeline_mode<synchronous>, transform_indices = @transform_3, window_bounds = array<i64: 256, 512>}, {pipeline_mode = #tpu.pipeline_mode<synchronous>, transform_indices = @transform_4, window_bounds = array<i64: 1, 512>}, {pipeline_mode = #tpu.pipeline_mode<synchronous>, transform_indices = @transform_5, window_bounds = array<i64: 1, 512>}, {pipeline_mode = #tpu.pipeline_mode<synchronous>, transform_indices = @transform_6, window_bounds = array<i64: 1, 1>}, {transform_indices = @transform_7, window_bounds = array<i64: 16, 1>}]} {
    %c0 = arith.constant 0 : index
    %c0_0 = arith.constant 0 : index
    %0 = vector.load %arg1[%c0, %c0_0] : memref<16x32xbf16, #tpu.memory_space<vmem>>, vector<16x32xbf16>
    %c0_1 = arith.constant 0 : index
    %c0_2 = arith.constant 0 : index
    %1 = vector.load %arg2[%c0_1, %c0_2] : memref<32x256xbf16, #tpu.memory_space<vmem>>, vector<32x256xbf16>
    %cst = arith.constant dense<0.000000e+00> : vector<16x256xf32>
    %2 = tpu.matmul %0, %1, %cst {dimension_numbers = #tpu.dot_dimension_numbers<[1], [0], [0], [1], [0, 0, 1, 1], [], []>} : vector<16x32xbf16>, vector<32x256xbf16>, vector<16x256xf32> -> vector<16x256xf32>
    %c0_3 = arith.constant 0 : index
    %c0_4 = arith.constant 0 : index
    %3 = vector.load %arg3[%c0_3, %c0_4] : memref<1x256xf32, #tpu.memory_space<vmem>>, vector<1x256xf32>
    %4 = vector.broadcast %3 : vector<1x256xf32> to vector<16x256xf32>
    %5 = arith.addf %2, %4 : vector<16x256xf32>
    %6 = math.tanh %5 : vector<16x256xf32>
    %7 = arith.truncf %6 : vector<16x256xf32> to vector<16x256xbf16>
    %c0_5 = arith.constant 0 : index
    %c0_6 = arith.constant 0 : index
    %8 = vector.load %arg4[%c0_5, %c0_6] : memref<256x512xbf16, #tpu.memory_space<vmem>>, vector<256x512xbf16>
    %cst_7 = arith.constant dense<0.000000e+00> : vector<16x512xf32>
    %9 = tpu.matmul %7, %8, %cst_7 {dimension_numbers = #tpu.dot_dimension_numbers<[1], [0], [0], [1], [0, 0, 1, 1], [], []>} : vector<16x256xbf16>, vector<256x512xbf16>, vector<16x512xf32> -> vector<16x512xf32>
    %c0_8 = arith.constant 0 : index
    %c0_9 = arith.constant 0 : index
    %10 = vector.load %arg5[%c0_8, %c0_9] : memref<1x512xf32, #tpu.memory_space<vmem>>, vector<1x512xf32>
    %11 = vector.broadcast %10 : vector<1x512xf32> to vector<16x512xf32>
    %12 = arith.addf %9, %11 : vector<16x512xf32>
    %13 = math.tanh %12 : vector<16x512xf32>
    %c0_10 = arith.constant 0 : index
    %c0_11 = arith.constant 0 : index
    %14 = vector.load %arg6[%c0_10, %c0_11] : memref<1x512xf32, #tpu.memory_space<vmem>>, vector<1x512xf32>
    %15 = vector.broadcast %14 : vector<1x512xf32> to vector<16x512xf32>
    %16 = arith.mulf %13, %15 : vector<16x512xf32>
    %cst_12 = arith.constant dense<0.000000e+00> : vector<16xf32>
    %17 = vector.multi_reduction <add>, %16, %cst_12 [1] : vector<16x512xf32> to vector<16xf32>
    %18 = vector.shape_cast %17 : vector<16xf32> to vector<16x1xf32>
    %c0_13 = arith.constant 0 : index
    %c0_14 = arith.constant 0 : index
    %19 = vector.load %arg7[%c0_13, %c0_14] : memref<1x1xf32, #tpu.memory_space<vmem>>, vector<1x1xf32>
    %20 = vector.broadcast %19 : vector<1x1xf32> to vector<16x1xf32>
    %21 = arith.addf %18, %20 : vector<16x1xf32>
    %c0_15 = arith.constant 0 : index
    %c0_16 = arith.constant 0 : index
    %22 = vector.load %arg8[%c0_15, %c0_16] : memref<16x1xf32, #tpu.memory_space<vmem>>, vector<16x1xf32>
    tpu.vector_store %arg8[%c0_15, %c0_16], %21 {strides = array<i32>} : memref<16x1xf32, #tpu.memory_space<vmem>>, vector<16x1xf32>,
    return
  }
  func.func @transform_0(%arg0: i32) -> (i32, i32) {
    %c0_i32 = arith.constant 0 : i32
    %c0_i32_0 = arith.constant 0 : i32
    return %arg0, %c0_i32 : i32, i32
  }
  func.func @transform_1(%arg0: i32) -> (i32, i32) {
    %c0_i32 = arith.constant 0 : i32
    %c0_i32_0 = arith.constant 0 : i32
    %c0_i32_1 = arith.constant 0 : i32
    return %c0_i32, %c0_i32_0 : i32, i32
  }
  func.func @transform_2(%arg0: i32) -> (i32, i32) {
    %c0_i32 = arith.constant 0 : i32
    %c0_i32_0 = arith.constant 0 : i32
    %c0_i32_1 = arith.constant 0 : i32
    return %c0_i32, %c0_i32_0 : i32, i32
  }
  func.func @transform_3(%arg0: i32) -> (i32, i32) {
    %c0_i32 = arith.constant 0 : i32
    %c0_i32_0 = arith.constant 0 : i32
    %c0_i32_1 = arith.constant 0 : i32
    return %c0_i32, %c0_i32_0 : i32, i32
  }
  func.func @transform_4(%arg0: i32) -> (i32, i32) {
    %c0_i32 = arith.constant 0 : i32
    %c0_i32_0 = arith.constant 0 : i32
    %c0_i32_1 = arith.constant 0 : i32
    return %c0_i32, %c0_i32_0 : i32, i32
  }
  func.func @transform_5(%arg0: i32) -> (i32, i32) {
    %c0_i32 = arith.constant 0 : i32
    %c0_i32_0 = arith.constant 0 : i32
    %c0_i32_1 = arith.constant 0 : i32
    return %c0_i32, %c0_i32_0 : i32, i32
  }
  func.func @transform_6(%arg0: i32) -> (i32, i32) {
    %c0_i32 = arith.constant 0 : i32
    %c0_i32_0 = arith.constant 0 : i32
    %c0_i32_1 = arith.constant 0 : i32
    return %c0_i32, %c0_i32_0 : i32, i32
  }
  func.func @transform_7(%arg0: i32) -> (i32, i32) {
    %c0_i32 = arith.constant 0 : i32
    %c0_i32_0 = arith.constant 0 : i32
    return %arg0, %c0_i32 : i32, i32
  }
}

</mosaic_0001>

<bundles_post_ra>
// kernel: tpu_custom_call.1
= control target key start
LH: loop header
LB: loop body
LE: loop exit
PB: predicated region body
PF: predicated region fallthrough
CT: control target
= control target key end

     0   :  { %s1116_s0 = inlined_call_operand.hbm [shape: bf16[16,32], index: 0, kind: input, shape index: {}]   ;;  %s1117_s1 = inlined_call_operand.hbm [shape: bf16[32,256], index: 1, kind: input, shape index: {}]   ;;  %s1118_s2 = inlined_call_operand.hbm [shape: f32[1,256], index: 2, kind: input, shape index: {}]   ;;  %s1119_s3 = inlined_call_operand.hbm [shape: bf16[256,512], index: 3, kind: input, shape index: {}]   ;;  %s1120_s4 = inlined_call_operand.vmem [shape: f32[1,512], index: 4, kind: input, shape index: {}]   ;;  %s1121_s5 = inlined_call_operand.vmem [shape: f32[1,512], index: 5, kind: input, shape index: {}]   ;;  %s1122_s6 = inlined_call_operand.<no memory space> [shape: f32[1,1], index: 6, kind: input, shape index: {}]   ;;  %s1123_s7 = inlined_call_operand.vmem [shape: f32[16,1], index: 7, kind: output, shape index: {}]  }
   0x1   :  { %v12_v0 = vstv %s1122_s6 }
   0x2   :  { %13 = vst [vmem:[#allocation2] sm:$0x1] %v12_v0 }
   0x3   :  { %14 = vsyncpa [#allocation4], 0 }
   0x4   :  { %15 = vsyncpa [#allocation6], 0 }
   0x5   :  { %16 = vsyncpa [#allocation9], 0  ;;  %s1032_s26 = smov [#allocation5]  }
   0x6   :  { %s34_s27 = sshll.u32 %s1032_s26, 4  ;;  %s35_s27 = int_to_ptr.vmem [resolvable:$true] %s34_s27 }
   0x7   :  { %s954_s28 = scalar_lea.vmem %s35_s27, 512  ;;  %p959_p1 = scmp.lt.s32.totalorder %s35_s27, %s35_s27 }
   0x8   :  { %p955_p0 = scmp.ne.s32.totalorder %s35_s27, %s954_s28  ;;  %p960_p2 = scmp.lt.s32.totalorder %s954_s28, %s954_s28 }
   0xa   :  { %p961_p3 = por %p960_p2, %p959_p1 }
   0xc   :  { %p962_p4 = pnand %p961_p3, %p955_p0 }
   0xe   :  { %965 = shalt.err (!%p962_p4)
}
   0xf   :  { %s1033_s29 = smov 128   ;;  %s1034_s30 = smov 8  }
  0x10   :  { %40 = dma.hbm_to_vmem [thread:$0]  %s1117_s1, 512, %s35_s27, [#allocation6], %s1033_s29, %s1033_s29, %s1034_s30  }
  0x11   :  { %s1035_s6 = smov [#allocation3]  }
  0x12   :  { %s22_s10 = sshll.u32 %s1035_s6, 4  ;;  %s23_s10 = int_to_ptr.vmem [resolvable:$true] %s22_s10 }
  0x13   :  { %s974_s11 = scalar_lea.vmem %s23_s10, 128  ;;  %p979_p6 = scmp.lt.s32.totalorder %s23_s10, %s23_s10 }
  0x14   :  { %p975_p5 = scmp.ne.s32.totalorder %s23_s10, %s974_s11  ;;  %p980_p7 = scmp.lt.s32.totalorder %s974_s11, %s974_s11 }
  0x16   :  { %p981_p8 = por %p980_p7, %p979_p6 }
  0x18   :  { %p982_p9 = pnand %p981_p8, %p975_p5 }
  0x1a   :  { %985 = shalt.err (!%p982_p9)
}
  0x1b   :  { %s1036_s12 = smov 64   ;;  %s1037_s13 = smov 4  }
  0x1c   :  { %28 = dma.hbm_to_vmem [thread:$0]  %s1116_s0, 128, %s23_s10, [#allocation4], %s1036_s12, %s1036_s12, %s1037_s13  }
  0x1d   :  { %s1038_s16 = smov [#allocation7]   ;;  %s1039_s18 = smov [#allocation8]  }
  0x1e   :  { %s47_s17 = sshll.u32 %s1038_s16, 4  ;;  %s56_s1 = sshll.u32 %s1039_s18, 4  ;;  %s48_s17 = int_to_ptr.vmem [resolvable:$true] %s47_s17  ;;  %s57_s1 = int_to_ptr.vmem [resolvable:$true] %s56_s1 }
  0x1f   :  { %s994_s19 = scalar_lea.vmem %s48_s17, 32  ;;  %p999_p11 = scmp.lt.s32.totalorder %s48_s17, %s48_s17 }
  0x20   :  { %p995_p10 = scmp.ne.s32.totalorder %s48_s17, %s994_s19  ;;  %p1000_p12 = scmp.lt.s32.totalorder %s994_s19, %s994_s19 }
  0x22   :  { %p1001_p13 = por %p1000_p12, %p999_p11 }
  0x24   :  { %p1002_p0 = pnand %p1001_p13, %p995_p10 }
  0x26   :  { %1005 = shalt.err (!%p1002_p0)
}
  0x27   :  { %50 = dma.hbm_to_vmem [thread:$0]  %s1118_s2, 32, %s48_s17, [#allocation6]  }
  0x28   :  { %s1014_s22 = scalar_lea.vmem %s57_s1, 8192  ;;  %p1019_p2 = scmp.lt.s32.totalorder %s57_s1, %s57_s1 }
  0x29   :  { %p1015_p1 = scmp.ne.s32.totalorder %s57_s1, %s1014_s22  ;;  %p1020_p3 = scmp.lt.s32.totalorder %s1014_s22, %s1014_s22 }
  0x2b   :  { %p1021_p4 = por %p1020_p3, %p1019_p2 }
  0x2d   :  { %p1022_p5 = pnand %p1021_p4, %p1015_p1 }
  0x2f   :  { %1025 = shalt.err (!%p1022_p5)
}
  0x30   :  { %s1040_s0 = smov 256   ;;  %s1041_s23 = smov 16  }
  0x31   :  { %62 = dma.hbm_to_vmem [thread:$0]  %s1119_s3, 8192, %s57_s1, [#allocation9], %s1040_s0, %s1040_s0, %s1041_s23  }
  0x32   :  { %1026 = dma.done.wait [#allocation4], 128  }
  0x33   :  { %1027 = vsyncadd [#allocation4], 4294967168 }
  0x34   :  { %1028 = dma.done.wait [#allocation6], 544  }
  0x35   :  { %1029 = vsyncadd [#allocation6], 4294966752 }
  0x36   :  { %1030 = dma.done.wait [#allocation9], 8192  }
  0x37   :  { %1031 = vsyncadd [#allocation9], 4294959104  ;;  %v1042_v1 = vmov 0   ;;  %v819_v2 = vld [vmem:[#allocation5 + $0x14] ss:$8 sps:$4 sm:$0xff]   ;;  %vm125_vm0 = vcmask 261120  }
  0x38   :  { %161 = vmatprep.mubr.bf16.mxu0 %v1042_v1  ;;  %v821_v3 = vld [vmem:[#allocation5 + $0x10] ss:$8 sps:$4 sm:$0xff]   ;;  %141 = vmatprep.subr.bf16.mxu0 %v819_v2  ;;  %v822_v4 = vld [vmem:[#allocation5 + $0x4] ss:$8 sps:$4 sm:$0xff]   ;;  %v824_v5 = vld [vmem:[#allocation5] ss:$8 sps:$4 sm:$0xff]  }
  0x39   :  { %142 = vmatpush1.bf16.msra.mxu0 %v821_v3  ;;  %v825_v6 = vld [vmem:[#allocation3] sm:$0xff]   ;;  %v831_v10 = vld [vmem:[#allocation8 + $0xe0] ss:$16 sps:$4 sm:$0xff]   ;;  %vm727_vm1 = vcmask 7168  }
  0x3a   :  { %143 = vmatprep.subr.bf16.mxu0 %v822_v4  ;;  %v826_v7 = vld [vmem:[#allocation8 + $0xe4] ss:$16 sps:$4 sm:$0xff]   ;;  %v828_v8 = vld [vmem:[#allocation8 + $0xe8] ss:$16 sps:$4 sm:$0xff]   ;;  %v830_v9 = vld [vmem:[#allocation8 + $0xec] ss:$16 sps:$4 sm:$0xff]  }
  0x3b   :  { %584 = vmatprep.subr.bf16.mxu1 %v826_v7  ;;  %v832_v11 = vld [vmem:[#allocation8 + $0xc4] ss:$16 sps:$4 sm:$0xff]   ;;  %v836_v12 = vld [vmem:[#allocation8 + $0xcc] ss:$16 sps:$4 sm:$0xff]   ;;  %v837_v13 = vld [vmem:[#allocation8 + $0xc0] ss:$16 sps:$4 sm:$0xff]   ;;  %v90_v7 = vlaneseq }
  0x3c   :  { %585 = vmatpush1.bf16.msra.mxu1 %v831_v10  ;;  %v838_v14 = vld [vmem:[#allocation8 + $0xa4] ss:$16 sps:$4 sm:$0xff]   ;;  %v834_v15 = vld [vmem:[#allocation8 + $0xc8] ss:$16 sps:$4 sm:$0xff]   ;;  %v842_v16 = vld [vmem:[#allocation8 + $0xac] ss:$16 sps:$4 sm:$0xff]  }
  0x3d   :  { %144 = vmatpush1.bf16.msra.mxu0 %v824_v5  ;;  %586 = vmatprep.subr.bf16.mxu1 %v832_v11  ;;  %v843_v17 = vld [vmem:[#allocation8 + $0xa0] ss:$16 sps:$4 sm:$0xff]   ;;  %v844_v18 = vld [vmem:[#allocation8 + $0x84] ss:$16 sps:$4 sm:$0xff]   ;;  %v840_v19 = vld [vmem:[#allocation8 + $0xa8] ss:$16 sps:$4 sm:$0xff]  }
  0x3e   :  { %627 = vmatprep.subr.bf16.mxu0 %v830_v9  ;;  %v848_v20 = vld [vmem:[#allocation8 + $0x8c] ss:$16 sps:$4 sm:$0xff]   ;;  %v849_v21 = vld [vmem:[#allocation8 + $0x80] ss:$16 sps:$4 sm:$0xff]   ;;  %v850_v22 = vld [vmem:[#allocation8 + $0x64] ss:$16 sps:$4 sm:$0xff]  }
  0x3f   :  { %v846_v23 = vld [vmem:[#allocation8 + $0x88] ss:$16 sps:$4 sm:$0xff]   ;;  %v854_v24 = vld [vmem:[#allocation8 + $0x6c] ss:$16 sps:$4 sm:$0xff]   ;;  %v855_v25 = vld [vmem:[#allocation8 + $0x60] ss:$16 sps:$4 sm:$0xff]  }
  0x40   :  { %742 = vmatmul.mubr.msk.bf16.vlgmr.msra.gmra.mxu0 %vm125_vm0, %v825_v6  ;;  %587 = vmatpush1.bf16.msra.mxu1 %v837_v13  ;;  %v856_v26 = vld [vmem:[#allocation8 + $0x44] ss:$16 sps:$4 sm:$0xff]   ;;  %v852_v27 = vld [vmem:[#allocation8 + $0x68] ss:$16 sps:$4 sm:$0xff]   ;;  %v860_v28 = vld [vmem:[#allocation8 + $0x4c] ss:$16 sps:$4 sm:$0xff]  }
  0x41   :  { %628 = vmatpush1.bf16.msra.mxu0 %v828_v8  ;;  %588 = vmatprep.subr.bf16.mxu1 %v838_v14  ;;  %v861_v29 = vld [vmem:[#allocation8 + $0x40] ss:$16 sps:$4 sm:$0xff]   ;;  %v862_v30 = vld [vmem:[#allocation8 + $0x24] ss:$16 sps:$4 sm:$0xff]   ;;  %v858_v31 = vld [vmem:[#allocation8 + $0x48] ss:$16 sps:$4 sm:$0xff]  }
  0x42   :  { %629 = vmatprep.subr.bf16.mxu0 %v836_v12  ;;  %v866_v32 = vld [vmem:[#allocation8 + $0x2c] ss:$16 sps:$4 sm:$0xff]   ;;  %v867_v33 = vld [vmem:[#allocation8 + $0x20] ss:$16 sps:$4 sm:$0xff]   ;;  %v864_v34 = vld [vmem:[#allocation8 + $0x28] ss:$16 sps:$4 sm:$0xff]  }
  0x43   :  { %v868_v35 = vld [vmem:[#allocation8 + $0x4] ss:$16 sps:$4 sm:$0xff]   ;;  %v872_v36 = vld [vmem:[#allocation8 + $0xc] ss:$16 sps:$4 sm:$0xff]   ;;  %v873_v37 = vld [vmem:[#allocation8] ss:$16 sps:$4 sm:$0xff]  }
  0x44   :  { %589 = vmatpush1.bf16.msra.mxu1 %v843_v17  ;;  %v874_v38 = vld [vmem:[#allocation8 + $0x1e4] ss:$16 sps:$4 sm:$0xff]   ;;  %v870_v39 = vld [vmem:[#allocation8 + $0x8] ss:$16 sps:$4 sm:$0xff]   ;;  %v878_v40 = vld [vmem:[#allocation8 + $0x1ec] ss:$16 sps:$4 sm:$0xff]  }
  0x45   :  { %630 = vmatpush1.bf16.msra.mxu0 %v834_v15  ;;  %590 = vmatprep.subr.bf16.mxu1 %v844_v18  ;;  %v879_v41 = vld [vmem:[#allocation8 + $0x1e0] ss:$16 sps:$4 sm:$0xff]   ;;  %v880_v42 = vld [vmem:[#allocation8 + $0x1c4] ss:$16 sps:$4 sm:$0xff]   ;;  %v876_v43 = vld [vmem:[#allocation8 + $0x1e8] ss:$16 sps:$4 sm:$0xff]  }
  0x46   :  { %631 = vmatprep.subr.bf16.mxu0 %v842_v16  ;;  %v884_v44 = vld [vmem:[#allocation8 + $0x1cc] ss:$16 sps:$4 sm:$0xff]   ;;  %v885_v45 = vld [vmem:[#allocation8 + $0x1c0] ss:$16 sps:$4 sm:$0xff]   ;;  %v882_v46 = vld [vmem:[#allocation8 + $0x1c8] ss:$16 sps:$4 sm:$0xff]  }
  0x47   :  { %v886_v47 = vld [vmem:[#allocation8 + $0x1a4] ss:$16 sps:$4 sm:$0xff]   ;;  %v890_v48 = vld [vmem:[#allocation8 + $0x1ac] ss:$16 sps:$4 sm:$0xff]   ;;  %v888_v49 = vld [vmem:[#allocation8 + $0x1a8] ss:$16 sps:$4 sm:$0xff]  }
  0x48   :  { %591 = vmatpush1.bf16.msra.mxu1 %v849_v21  ;;  %v891_v50 = vld [vmem:[#allocation8 + $0x1a0] ss:$16 sps:$4 sm:$0xff]   ;;  %v892_v51 = vld [vmem:[#allocation8 + $0x184] ss:$16 sps:$4 sm:$0xff]   ;;  %v896_v52 = vld [vmem:[#allocation8 + $0x18c] ss:$16 sps:$4 sm:$0xff]  }
  0x49   :  { %632 = vmatpush1.bf16.msra.mxu0 %v840_v19  ;;  %592 = vmatprep.subr.bf16.mxu1 %v850_v22  ;;  %v894_v53 = vld [vmem:[#allocation8 + $0x188] ss:$16 sps:$4 sm:$0xff]   ;;  %v897_v54 = vld [vmem:[#allocation8 + $0x180] ss:$16 sps:$4 sm:$0xff]   ;;  %v898_v55 = vld [vmem:[#allocation8 + $0x164] ss:$16 sps:$4 sm:$0xff]  }
  0x4a   :  { %633 = vmatprep.subr.bf16.mxu0 %v848_v20  ;;  %v902_v56 = vld [vmem:[#allocation8 + $0x16c] ss:$16 sps:$4 sm:$0xff]   ;;  %v900_v57 = vld [vmem:[#allocation8 + $0x168] ss:$16 sps:$4 sm:$0xff]   ;;  %v903_v58 = vld [vmem:[#allocation8 + $0x160] ss:$16 sps:$4 sm:$0xff]  }
  0x4b   :  { %v904_v59 = vld [vmem:[#allocation8 + $0x144] ss:$16 sps:$4 sm:$0xff]   ;;  %v908_v60 = vld [vmem:[#allocation8 + $0x14c] ss:$16 sps:$4 sm:$0xff]   ;;  %v906_v61 = vld [vmem:[#allocation8 + $0x148] ss:$16 sps:$4 sm:$0xff]  }
  0x4c   :  { %593 = vmatpush1.bf16.msra.mxu1 %v855_v25  ;;  %v909_v62 = vld [vmem:[#allocation8 + $0x140] ss:$16 sps:$4 sm:$0xff]   ;;  %v910_v63 = vld [vmem:[#allocation8 + $0x124] ss:$16 sps:$4 sm:$0xff]   ;;  %v914_v0 = vld [vmem:[#allocation8 + $0x12c] ss:$16 sps:$4 sm:$0xff]  }
  0x4d   :  { %634 = vmatpush1.bf16.msra.mxu0 %v846_v23  ;;  %594 = vmatprep.subr.bf16.mxu1 %v856_v26  ;;  %v912_v1 = vld [vmem:[#allocation8 + $0x128] ss:$16 sps:$4 sm:$0xff]   ;;  %v915_v2 = vld [vmem:[#allocation8 + $0x120] ss:$16 sps:$4 sm:$0xff]   ;;  %v916_v3 = vld [vmem:[#allocation8 + $0x104] ss:$16 sps:$4 sm:$0xff]  }
  0x4e   :  { %635 = vmatprep.subr.bf16.mxu0 %v854_v24  ;;  %v920_v4 = vld [vmem:[#allocation8 + $0x10c] ss:$16 sps:$4 sm:$0xff]   ;;  %v918_v5 = vld [vmem:[#allocation8 + $0x108] ss:$16 sps:$4 sm:$0xff]   ;;  %v921_v6 = vld [vmem:[#allocation8 + $0x100] ss:$16 sps:$4 sm:$0xff]  }
  0x4f   :  { %v1098_v8 = vshrl.u32 %v90_v7, 7  ;;  %v88_v10 = vld [vmem:[#allocation7] sm:$0x3] }
  0x50   :  { %595 = vmatpush1.bf16.msra.mxu1 %v861_v29  ;;  %v242_v29 = vld [vmem:[%s1120_s4] sm:$0xf] }
  0x51   :  { %636 = vmatpush1.bf16.msra.mxu0 %v852_v27  ;;  %596 = vmatprep.subr.bf16.mxu1 %v862_v30  ;;  %v96_v9 = vsub.s32 1, %v1098_v8  ;;  %v92_v11 = vsub.s32 0, %v1098_v8  ;;  %v258_v30 = vsub.s32 3, %v1098_v8 }
  0x52   :  { %637 = vmatprep.subr.bf16.mxu0 %v860_v28  ;;  %v254_v28 = vsub.s32 2, %v1098_v8 }
  0x53   :  { %v97_v12 = vrot.slane %v88_v10, %v96_v9  ;;  %v93_v14 = vrot.slane %v88_v10, %v92_v11 }
  0x54   :  { %597 = vmatpush1.bf16.msra.mxu1 %v867_v33  ;;  %v251_v33 = vrot.slane %v242_v29, %v96_v9 }
  0x55   :  { %638 = vmatpush1.bf16.msra.mxu0 %v858_v31  ;;  %598 = vmatprep.subr.bf16.mxu1 %v868_v35  ;;  %v247_v31 = vrot.slane %v242_v29, %v92_v11 }
  0x56   :  { %639 = vmatprep.subr.bf16.mxu0 %v866_v32  ;;  %v255_v32 = vrot.slane %v242_v29, %v254_v28 }
  0x58   :  { %599 = vmatpush1.bf16.msra.mxu1 %v873_v37 }
  0x59   :  { %640 = vmatpush1.bf16.msra.mxu0 %v864_v34  ;;  %600 = vmatprep.subr.bf16.mxu1 %v874_v38  ;;  %v259_v34 = vrot.slane %v242_v29, %v258_v30 }
  0x5a   :  { %641 = vmatprep.subr.bf16.mxu0 %v872_v36 }
  0x5c   :  { %601 = vmatpush2.bf16.msra.mxu1 %v879_v41 }
  0x5d   :  { %642 = vmatpush1.bf16.msra.mxu0 %v870_v39  ;;  %602 = vmatprep.subr.bf16.mxu1 %v880_v42 }
  0x5e   :  { %643 = vmatprep.subr.bf16.mxu0 %v878_v40 }
  0x60   :  { %603 = vmatpush2.bf16.msra.mxu1 %v885_v45 }
  0x61   :  { %644 = vmatpush2.bf16.msra.mxu0 %v876_v43  ;;  %604 = vmatprep.subr.bf16.mxu1 %v886_v47 }
  0x62   :  { %645 = vmatprep.subr.bf16.mxu0 %v884_v44 }
  0x64   :  { %605 = vmatpush2.bf16.msra.mxu1 %v891_v50 }
  0x65   :  { %646 = vmatpush2.bf16.msra.mxu0 %v882_v46  ;;  %606 = vmatprep.subr.bf16.mxu1 %v892_v51  ;;  %v678_v51 = vld [vmem:[%s1121_s5] sm:$0xf] }
  0x66   :  { %647 = vmatprep.subr.bf16.mxu0 %v890_v48 }
  0x68   :  { %607 = vmatpush2.bf16.msra.mxu1 %v897_v54 }
  0x69   :  { %648 = vmatpush2.bf16.msra.mxu0 %v888_v49  ;;  %608 = vmatprep.subr.bf16.mxu1 %v898_v55 }
  0x6a   :  { %649 = vmatprep.subr.bf16.mxu0 %v896_v52  ;;  %v683_v52 = vrot.slane %v678_v51, %v92_v11 }
  0x6c   :  { %609 = vmatpush2.bf16.msra.mxu1 %v903_v58 }
  0x6d   :  { %650 = vmatpush2.bf16.msra.mxu0 %v894_v53  ;;  %610 = vmatprep.subr.bf16.mxu1 %v904_v59  ;;  %v687_v53 = vrot.slane %v678_v51, %v96_v9  ;;  %v695_v59 = vrot.slane %v678_v51, %v258_v30 }
  0x6e   :  { %651 = vmatprep.subr.bf16.mxu0 %v902_v56  ;;  %v691_v56 = vrot.slane %v678_v51, %v254_v28 }
  0x70   :  { %611 = vmatpush2.bf16.msra.mxu1 %v909_v62 }
  0x71   :  { %652 = vmatpush2.bf16.msra.mxu0 %v900_v57  ;;  %612 = vmatprep.subr.bf16.mxu1 %v910_v63 }
  0x72   :  { %653 = vmatprep.subr.bf16.mxu0 %v908_v60 }
  0x74   :  { %613 = vmatpush2.bf16.msra.mxu1 %v915_v2 }
  0x75   :  { %654 = vmatpush2.bf16.msra.mxu0 %v906_v61  ;;  %614 = vmatprep.subr.bf16.mxu1 %v916_v3 }
  0x76   :  { %655 = vmatprep.subr.bf16.mxu0 %v914_v0 }
  0x78   :  { %615 = vmatpush2.bf16.msra.mxu1 %v921_v6 }
  0x79   :  { %656 = vmatpush2.bf16.msra.mxu0 %v912_v1 }
  0x7a   :  { %657 = vmatprep.subr.bf16.mxu0 %v920_v4 }
  0x7d   :  { %658 = vmatpush2.bf16.msra.mxu0 %v918_v5 }
 0x100   :  { %v163_v13 = vpop.f32.mrf.mxu0 }
 0x101   :  { %v164_v19 = vadd.f32 %v163_v13, %v93_v14 }
 0x102   :  { %v165_v15 = vpop.f32.mrf.mxu0 }
 0x103   :  { %v166_v16 = vadd.f32 %v165_v15, %v97_v12 }
 0x104   :  { %v167_v17 = vpop.f32.mrf.mxu0 }
 0x105   :  { %v168_v18 = vadd.f32 %v167_v17, %v93_v14  ;;  %922 = vtanh.f32 %v166_v16  ;;  %v807_v14 = vld [vmem:[#allocation2] ss:$0 sm:$0xff] }
 0x106   :  { %v169_v20 = vpop.f32.mrf.mxu0 }
 0x107   :  { %v170_v21 = vadd.f32 %v169_v20, %v97_v12  ;;  %924 = vtanh.f32 %v168_v18 }
 0x109   :  { %926 = vtanh.f32 %v170_v21 }
 0x10a   :  { %928 = vtanh.f32 %v164_v19 }
 0x112   :  { %v923_v22 = vpop.eup %922 }
 0x114   :  { %v925_v23 = vpop.eup %924 }
 0x116   :  { %v927_v24 = vpop.eup %926 }
 0x117   :  { %v929_v25 = vpop.eup %928  ;;  %v177_v26 = vpack.c.bf16 %v927_v24, %v923_v22 }
 0x118   :  { %v176_v27 = vpack.c.bf16 %v925_v23, %v929_v25 }
 0x119   :  { %616 = vmatprep.mubr.bf16.mxu1 %v177_v26  ;;  %659 = vmatprep.mubr.bf16.mxu0 %v177_v26 }
 0x11a   :  { %617 = vmatmul.mubr.bf16.vlgmr.msra.gmra.mxu1 %v176_v27  ;;  %660 = vmatmul.mubr.bf16.vlgmr.msra.gmra.mxu0 %v176_v27 }
 0x1da   :  { %v618_v35 = vpop.f32.mrf.mxu1  ;;  %v661_v36 = vpop.f32.mrf.mxu0 }
 0x1db   :  { %v619_v37 = vadd.f32 %v618_v35, %v247_v31  ;;  %v662_v38 = vadd.f32 %v661_v36, %v255_v32 }
 0x1dc   :  { %v620_v39 = vpop.f32.mrf.mxu1  ;;  %v663_v40 = vpop.f32.mrf.mxu0 }
 0x1dd   :  { %930 = vtanh.f32 %v619_v37  ;;  %v621_v41 = vadd.f32 %v620_v39, %v251_v33  ;;  %v664_v42 = vadd.f32 %v663_v40, %v259_v34 }
 0x1de   :  { %932 = vtanh.f32 %v662_v38  ;;  %v622_v43 = vpop.f32.mrf.mxu1  ;;  %v665_v44 = vpop.f32.mrf.mxu0 }
 0x1df   :  { %934 = vtanh.f32 %v621_v41  ;;  %v623_v45 = vadd.f32 %v622_v43, %v247_v31  ;;  %v666_v46 = vadd.f32 %v665_v44, %v255_v32 }
 0x1e0   :  { %936 = vtanh.f32 %v664_v42  ;;  %v624_v47 = vpop.f32.mrf.mxu1  ;;  %v667_v48 = vpop.f32.mrf.mxu0 }
 0x1e1   :  { %938 = vtanh.f32 %v623_v45  ;;  %v625_v49 = vadd.f32 %v624_v47, %v251_v33  ;;  %v668_v50 = vadd.f32 %v667_v48, %v259_v34 }
 0x1e2   :  { %940 = vtanh.f32 %v666_v46 }
 0x1e3   :  { %942 = vtanh.f32 %v625_v49 }
 0x1e4   :  { %944 = vtanh.f32 %v668_v50 }
 0x1ea   :  { %v931_v54 = vpop.eup %930 }
 0x1eb   :  { %v933_v55 = vpop.eup %932  ;;  %v700_v60 = vmul.f32 %v931_v54, %v683_v52 }
 0x1ec   :  { %v935_v57 = vpop.eup %934  ;;  %v702_v0 = vmul.f32 %v933_v55, %v691_v56 }
 0x1ed   :  { %v937_v58 = vpop.eup %936  ;;  %v701_v61 = vmul.f32 %v935_v57, %v687_v53 }
 0x1ee   :  { %v939_v62 = vpop.eup %938  ;;  %v703_v3 = vmul.f32 %v937_v58, %v695_v59 }
 0x1ef   :  { %v941_v63 = vpop.eup %940  ;;  %v708_v1 = vadd.f32 %v701_v61, %v700_v60  ;;  %v704_v5 = vmul.f32 %v939_v62, %v683_v52 }
 0x1f0   :  { %v943_v2 = vpop.eup %942  ;;  %v706_v9 = vmul.f32 %v941_v63, %v691_v56 }
 0x1f1   :  { %v709_v4 = vadd.f32 %v708_v1, %v702_v0  ;;  %v705_v6 = vmul.f32 %v943_v2, %v687_v53  ;;  %v945_v7 = vpop.eup %944 }
 0x1f2   :  { %v707_v11 = vmul.f32 %v945_v7, %v695_v59 }
 0x1f3   :  { %v710_v8 = vadd.f32 %v709_v4, %v703_v3  ;;  %v713_v10 = vadd.f32 %v705_v6, %v704_v5 }
 0x1f5   :  { %711 = vadd.xlane.f32.xlu0 %v710_v8  ;;  %v714_v12 = vadd.f32 %v713_v10, %v706_v9 }
 0x1f7   :  { %v715_v13 = vadd.f32 %v714_v12, %v707_v11 }
 0x1f9   :  { %716 = vadd.xlane.f32.xlu0 %v715_v13 }
 0x27e   :  { %v712_v15 = vpop.xlane.xlu0 %711 }
 0x27f   :  { %v725_v16 = vadd.f32 %v807_v14, %v712_v15 }
 0x281   :  { %728 = vst.msk [vmem:[%s1123_s7] sm:$0xff] %vm727_vm1, %v725_v16 }
 0x282   :  { %v717_v17 = vpop.xlane.xlu0 %716 }
 0x283   :  { %v726_v18 = vadd.f32 %v807_v14, %v717_v17 }
 0x285   :  { %729 = vst.msk [vmem:[%s1123_s7 + $0x8] sm:$0xff] %vm727_vm1, %v726_v18 }
 0x286   :  { %734 = vsyncpa [#allocation4], 1 }
 0x287   :  { %735 = vsyncpa [#allocation6], 1 }
 0x288   :  { %736 = vsyncpa [#allocation9], 1 }

</bundles_post_ra>
